<compile_context>
chip_gen: v6e
topology: v6e:2x2x1
jax: 0.10.0
libtpu: 0.0.40
codegen_flags: <defaults>
</compile_context>

<pallas_src>
import functools

import jax
import jax.numpy as jnp
from jax.experimental import pallas as pl
from jax.experimental.pallas import tpu as pltpu

SUBLANE = 8


def _round_up(n, m):
    return ((n + m - 1) // m) * m


def _make_kernel(in_dim, hid, out_dim):
    """Builds the fused MLP kernel, fully unrolled over the tiny feature dims."""

    def kernel(p_ref, x_ref, o_ref):
        # p_ref : (in_dim*hid + hid + hid*out_dim + out_dim,) f32 in SMEM
        #         layout: w1 row-major | b1 | w2 row-major | b2
        # x_ref : (tile_b, in_dim) f32 in VMEM
        # o_ref : (tile_b, out_dim) f32 in VMEM
        x = x_ref[...]
        xcols = [x[:, i:i + 1] for i in range(in_dim)]          # each (tile_b, 1)

        b1_off = in_dim * hid
        w2_off = b1_off + hid
        b2_off = w2_off + hid * out_dim

        # Hidden layer: h_j = relu(sum_i x_i * w1[i, j] + b1[j])  (VPU scalar MACs)
        hcols = []
        for j in range(hid):
            acc = xcols[0] * p_ref[0 * hid + j]
            for i in range(1, in_dim):
                acc = acc + xcols[i] * p_ref[i * hid + j]
            hcols.append(jnp.maximum(acc + p_ref[b1_off + j], 0.0))

        # Output layer: out_k = sum_j h_j * w2[j, k] + b2[k]
        ocols = []
        for k in range(out_dim):
            acc = hcols[0] * p_ref[w2_off + k]
            for j in range(1, hid):
                acc = acc + hcols[j] * p_ref[w2_off + j * out_dim + k]
            ocols.append(acc + p_ref[b2_off + k])

        out = ocols[0] if out_dim == 1 else jnp.concatenate(ocols, axis=-1)
        o_ref[...] = out

    return kernel


@functools.partial(jax.jit, static_argnames=("tile_b",))
def mlp2_forward(x, w1, b1, w2, b2, *, tile_b=4096):
    """out = relu(x @ w1 + b1) @ w2 + b2, fused in one Pallas TPU kernel.

    x : (..., in_dim) f32
    w1: (in_dim, hid)   b1: (hid,)     (PyTorch weights stored transposed)
    w2: (hid, out_dim)  b2: (out_dim,)
    """
    in_dim, hid = w1.shape
    out_dim = w2.shape[1]

    lead_shape = x.shape[:-1]
    x2 = x.reshape(-1, in_dim).astype(jnp.float32)
    B = x2.shape[0]

    # All 11 scalar parameters, flattened, resident in SMEM for the whole grid.
    params = jnp.concatenate(
        [w1.reshape(-1), b1.reshape(-1), w2.reshape(-1), b2.reshape(-1)]
    ).astype(jnp.float32)

    # Batch tile: full-extent single block for small B; otherwise a sublane-aligned
    # tile (ragged last block is masked by Pallas).  ~2 KiB/row of VMEM double-buffered
    # (narrow arrays occupy 128 lanes in VMEM), so 4096 rows ~ 8 MiB -> safe on
    # v5e/v6e/v7x default scoped-VMEM limits.
    tile_b = _round_up(max(tile_b, SUBLANE), SUBLANE)
    if B <= tile_b:
        tb = B                      # block == full array extent (always legal)
        grid = (1,)
    else:
        tb = tile_b
        grid = (pl.cdiv(B, tb),)

    cost = pl.CostEstimate(
        flops=2 * B * (in_dim * hid + hid * out_dim),
        transcendentals=0,
        bytes_accessed=B * (in_dim + out_dim) * 4 + params.size * 4,
    )

    out = pl.pallas_call(
        _make_kernel(in_dim, hid, out_dim),
        out_shape=jax.ShapeDtypeStruct((B, out_dim), jnp.float32),
        grid_spec=pltpu.PrefetchScalarGridSpec(
            num_scalar_prefetch=0,
            grid=grid,
            in_specs=[
                pl.BlockSpec(memory_space=pltpu.MemorySpace.SMEM),  # 11 scalars, resident
                pl.BlockSpec((tb, in_dim), lambda i: (i, 0)),       # batch-tiled x, unpadded
            ],
            out_specs=pl.BlockSpec((tb, out_dim), lambda i: (i, 0)),
        ),
        compiler_params=pltpu.CompilerParams(
            dimension_semantics=("parallel",),  # shard batch tiles across TCs on v7x
        ),
        cost_estimate=cost,
    )(params, x2)

    return out.reshape(*lead_shape, out_dim)


def init_params(key):
    """Deterministic init mimicking nn.Linear's uniform(-1/sqrt(fan_in), +1/sqrt(fan_in)).

    Weights are stored as (in_features, out_features) so the kernel computes x @ W.
    """
    k1, k2, k3, k4 = jax.random.split(key, 4)
    bound1 = 1.0 / jnp.sqrt(3.0)   # hidden: Linear(3, 2)
    bound2 = 1.0 / jnp.sqrt(2.0)   # output: Linear(2, 1)
    w1 = jax.random.uniform(k1, (3, 2), jnp.float32, -bound1, bound1)
    b1 = jax.random.uniform(k2, (2,), jnp.float32, -bound1, bound1)
    w2 = jax.random.uniform(k3, (2, 1), jnp.float32, -bound2, bound2)
    b2 = jax.random.uniform(k4, (1,), jnp.float32, -bound2, bound2)
    return w1, b1, w2, b2


if __name__ == "__main__":
    key = jax.random.PRNGKey(0)
    kx, kp = jax.random.split(key)
    x = jax.random.uniform(kx, (2, 3), jnp.float32)  # batch=2, in_features=3
    w1, b1, w2, b2 = init_params(kp)

    out = mlp2_forward(x, w1, b1, w2, b2)
    out = jax.block_until_ready(out)

    # Pure-JAX f32 reference; kernel is f32 throughout, so tolerance is tight.
    ref = jnp.maximum(x @ w1 + b1, 0.0) @ w2 + b2
    assert out.shape == (2, 1), out.shape
    assert jnp.allclose(out, ref, atol=1e-5, rtol=1e-5), (out, ref)

    print("KERNEL_OK")
</pallas_src>

<mosaic_0001>
module attributes {stable_mosaic.version = 11 : i64} {
  func.func @kernel(%arg0: i32, %arg1: memref<11xf32, #tpu.memory_space<smem>>, %arg2: memref<2x3xf32, #tpu.memory_space<vmem>>, %arg3: memref<2x1xf32, #tpu.memory_space<vmem>>) attributes {dimension_semantics = [#tpu.dimension_semantics<parallel>], iteration_bounds = array<i64: 1>, scalar_prefetch = 0 : i64, scratch_operands = 0 : i64, tpu.core_type = #tpu.core_type<tc>, window_params = [{transform_indices = @transform_0, window_bounds = array<i64: 11>}, {transform_indices = @transform_1, window_bounds = array<i64: 2, 3>}, {transform_indices = @transform_2, window_bounds = array<i64: 2, 1>}]} {
    %c0 = arith.constant 0 : index
    %c0_0 = arith.constant 0 : index
    %0 = vector.load %arg2[%c0, %c0_0] : memref<2x3xf32, #tpu.memory_space<vmem>>, vector<2x3xf32>
    %1 = vector.extract_strided_slice %0 {offsets = [0, 0], sizes = [2, 1], strides = [1, 1]} : vector<2x3xf32> to vector<2x1xf32>
    %2 = vector.extract_strided_slice %0 {offsets = [0, 1], sizes = [2, 1], strides = [1, 1]} : vector<2x3xf32> to vector<2x1xf32>
    %3 = vector.extract_strided_slice %0 {offsets = [0, 2], sizes = [2, 1], strides = [1, 1]} : vector<2x3xf32> to vector<2x1xf32>
    %c0_1 = arith.constant 0 : index
    %4 = memref.load %arg1[%c0_1] : memref<11xf32, #tpu.memory_space<smem>>
    %5 = vector.broadcast %4 : f32 to vector<2x1xf32>
    %6 = arith.mulf %1, %5 : vector<2x1xf32>
    %c2 = arith.constant 2 : index
    %7 = memref.load %arg1[%c2] : memref<11xf32, #tpu.memory_space<smem>>
    %8 = vector.broadcast %7 : f32 to vector<2x1xf32>
    %9 = arith.mulf %2, %8 : vector<2x1xf32>
    %10 = arith.addf %6, %9 : vector<2x1xf32>
    %c4 = arith.constant 4 : index
    %11 = memref.load %arg1[%c4] : memref<11xf32, #tpu.memory_space<smem>>
    %12 = vector.broadcast %11 : f32 to vector<2x1xf32>
    %13 = arith.mulf %3, %12 : vector<2x1xf32>
    %14 = arith.addf %10, %13 : vector<2x1xf32>
    %c6 = arith.constant 6 : index
    %15 = memref.load %arg1[%c6] : memref<11xf32, #tpu.memory_space<smem>>
    %16 = vector.broadcast %15 : f32 to vector<2x1xf32>
    %17 = arith.addf %14, %16 : vector<2x1xf32>
    %cst = arith.constant 0.000000e+00 : f32
    %18 = vector.broadcast %cst : f32 to vector<2x1xf32>
    %19 = arith.maximumf %17, %18 : vector<2x1xf32>
    %c1 = arith.constant 1 : index
    %20 = memref.load %arg1[%c1] : memref<11xf32, #tpu.memory_space<smem>>
    %21 = vector.broadcast %20 : f32 to vector<2x1xf32>
    %22 = arith.mulf %1, %21 : vector<2x1xf32>
    %c3 = arith.constant 3 : index
    %23 = memref.load %arg1[%c3] : memref<11xf32, #tpu.memory_space<smem>>
    %24 = vector.broadcast %23 : f32 to vector<2x1xf32>
    %25 = arith.mulf %2, %24 : vector<2x1xf32>
    %26 = arith.addf %22, %25 : vector<2x1xf32>
    %c5 = arith.constant 5 : index
    %27 = memref.load %arg1[%c5] : memref<11xf32, #tpu.memory_space<smem>>
    %28 = vector.broadcast %27 : f32 to vector<2x1xf32>
    %29 = arith.mulf %3, %28 : vector<2x1xf32>
    %30 = arith.addf %26, %29 : vector<2x1xf32>
    %c7 = arith.constant 7 : index
    %31 = memref.load %arg1[%c7] : memref<11xf32, #tpu.memory_space<smem>>
    %32 = vector.broadcast %31 : f32 to vector<2x1xf32>
    %33 = arith.addf %30, %32 : vector<2x1xf32>
    %cst_2 = arith.constant 0.000000e+00 : f32
    %34 = vector.broadcast %cst_2 : f32 to vector<2x1xf32>
    %35 = arith.maximumf %33, %34 : vector<2x1xf32>
    %c8 = arith.constant 8 : index
    %36 = memref.load %arg1[%c8] : memref<11xf32, #tpu.memory_space<smem>>
    %37 = vector.broadcast %36 : f32 to vector<2x1xf32>
    %38 = arith.mulf %19, %37 : vector<2x1xf32>
    %c9 = arith.constant 9 : index
    %39 = memref.load %arg1[%c9] : memref<11xf32, #tpu.memory_space<smem>>
    %40 = vector.broadcast %39 : f32 to vector<2x1xf32>
    %41 = arith.mulf %35, %40 : vector<2x1xf32>
    %42 = arith.addf %38, %41 : vector<2x1xf32>
    %c10 = arith.constant 10 : index
    %43 = memref.load %arg1[%c10] : memref<11xf32, #tpu.memory_space<smem>>
    %44 = vector.broadcast %43 : f32 to vector<2x1xf32>
    %45 = arith.addf %42, %44 : vector<2x1xf32>
    %c0_3 = arith.constant 0 : index
    %c0_4 = arith.constant 0 : index
    %46 = vector.load %arg3[%c0_3, %c0_4] : memref<2x1xf32, #tpu.memory_space<vmem>>, vector<2x1xf32>
    tpu.vector_store %arg3[%c0_3, %c0_4], %45 {strides = array<i32>} : memref<2x1xf32, #tpu.memory_space<vmem>>, vector<2x1xf32>,
    return
  }
  func.func @transform_0(%arg0: i32) -> i32 {
    %c0_i32 = arith.constant 0 : i32
    %c0_i32_0 = arith.constant 0 : i32
    return %c0_i32 : i32
  }
  func.func @transform_1(%arg0: i32) -> (i32, i32) {
    %c0_i32 = arith.constant 0 : i32
    %c0_i32_0 = arith.constant 0 : i32
    return %arg0, %c0_i32 : i32, i32
  }
  func.func @transform_2(%arg0: i32) -> (i32, i32) {
    %c0_i32 = arith.constant 0 : i32
    %c0_i32_0 = arith.constant 0 : i32
    return %arg0, %c0_i32 : i32, i32
  }
}

</mosaic_0001>

<bundles_post_ra>
// kernel: mlp2_forward.1
= control target key start
LH: loop header
LB: loop body
LE: loop exit
PB: predicated region body
PF: predicated region fallthrough
CT: control target
= control target key end

     0   :  { %7 = vsyncpa [#allocation3], 0  ;;  %s142_s0 = inlined_call_operand.vmem [shape: f32[11], index: 0, kind: input, shape index: {}]   ;;  %s143_s1 = inlined_call_operand.vmem [shape: f32[2,3], index: 1, kind: input, shape index: {}]   ;;  %s144_s2 = inlined_call_operand.vmem [shape: f32[2,1], index: 2, kind: output, shape index: {}]  }
   0x1   :  { %s14_s11 = sshll.u32 %s142_s0, 4  ;;  %s15_s11 = int_to_ptr.vmem [resolvable:$true] %s14_s11 }
   0x2   :  { %s101_s12 = scalar_lea.vmem %s15_s11, 16  ;;  %p106_p1 = scmp.lt.s32.totalorder %s15_s11, %s15_s11 }
   0x3   :  { %p102_p0 = scmp.ne.s32.totalorder %s15_s11, %s101_s12  ;;  %p107_p2 = scmp.lt.s32.totalorder %s101_s12, %s101_s12 }
   0x5   :  { %p108_p3 = por %p107_p2, %p106_p1 }
   0x7   :  { %p109_p4 = pnand %p108_p3, %p102_p0 }
   0x9   :  { %112 = shalt.err (!%p109_p4)
}
   0xa   :  { %s115_s13 = smov [#allocation2]  }
   0xb   :  { %17 = dma.vmem_to_smem %s15_s11, 16, %s115_s13, [#allocation3]  }
   0xc   :  { %113 = dma.done.wait [#allocation3], 16  }
   0xd   :  { %114 = vsyncadd [#allocation3], 4294967280 }
   0xe   :  { %23 = sfence }
   0xf   :  { %s88_s14 = sld [smem:[#allocation2 + $0x2]]  ;;  %v24_v0 = vld [vmem:[%s143_s1] sm:$0x3]  ;;  %s116_s0 = smov 127   ;;  %vm81_vm0 = vcmask 1024  }
  0x10   :  { %s89_s15 = sld [smem:[#allocation2 + $0x4]]  ;;  %s117_s20 = smov 126  }
  0x11   :  { %s92_s16 = sld [smem:[#allocation2 + $0x3]] }
  0x12   :  { %s93_s17 = sld [smem:[#allocation2 + $0x5]] }
  0x13   :  { %s25_s21 = sld [smem:[#allocation2]] }
  0x14   :  { %s91_s22 = sld [smem:[#allocation2 + $0x1]] }
  0x15   :  { %v29_v1 = vstv %s88_s14  ;;  %s90_s23 = sld [smem:[#allocation2 + $0x6]] }
  0x16   :  { %v30_v2 = vmul.f32 %v29_v1, %v24_v0  ;;  %v37_v3 = vstv %s89_s15  ;;  %s94_s1 = sld [smem:[#allocation2 + $0x7]] }
  0x17   :  { %v38_v4 = vmul.f32 %v37_v3, %v24_v0  ;;  %v52_v5 = vstv %s92_s16  ;;  %s95_s24 = sld [smem:[#allocation2 + $0x8]] }
  0x18   :  { %32 = vrot.lane.b32.xlu0 %v30_v2, %s116_s0  ;;  %v53_v6 = vmul.f32 %v52_v5, %v24_v0  ;;  %v60_v7 = vstv %s93_s17  ;;  %s96_s25 = sld [smem:[#allocation2 + $0x9]] }
  0x19   :  { %40 = vrot.lane.b32.xlu1 %v38_v4, %s117_s20  ;;  %v61_v8 = vmul.f32 %v60_v7, %v24_v0  ;;  %v26_v9 = vstv %s25_s21  ;;  %s97_s26 = sld [smem:[#allocation2 + $0xa]] }
  0x1a   :  { %v27_v10 = vmul.f32 %v26_v9, %v24_v0  ;;  %v49_v11 = vstv %s91_s22 }
  0x1b   :  { %v50_v15 = vmul.f32 %v49_v11, %v24_v0  ;;  %v45_v16 = vstv %s90_s23 }
  0x1c   :  { %55 = vrot.lane.b32.xlu0 %v53_v6, %s116_s0  ;;  %v68_v22 = vstv %s94_s1 }
  0x1d   :  { %63 = vrot.lane.b32.xlu1 %v61_v8, %s117_s20  ;;  %v72_v26 = vstv %s95_s24 }
  0x1e   :  { %v75_v27 = vstv %s96_s25 }
  0x1f   :  { %v79_v31 = vstv %s97_s26 }
  0x8a   :  { %v33_v12 = vpop.permute.xlu0 %32 }
  0x8b   :  { %v35_v13 = vadd.f32 %v33_v12, %v27_v10  ;;  %v41_v14 = vpop.permute.xlu1 %40 }
  0x8d   :  { %v43_v17 = vadd.f32 %v41_v14, %v35_v13 }
  0x8e   :  { %v56_v18 = vpop.permute.xlu0 %55 }
  0x8f   :  { %v46_v19 = vadd.f32 %v45_v16, %v43_v17  ;;  %v58_v20 = vadd.f32 %v56_v18, %v50_v15  ;;  %v64_v21 = vpop.permute.xlu1 %63 }
  0x91   :  { %v66_v23 = vadd.f32 %v64_v21, %v58_v20  ;;  %v47_v24 = vmax.f32 %v46_v19, 0.0 }
  0x93   :  { %v69_v25 = vadd.f32 %v68_v22, %v66_v23  ;;  %v73_v29 = vmul.f32 %v72_v26, %v47_v24 }
  0x95   :  { %v70_v28 = vmax.f32 %v69_v25, 0.0 }
  0x97   :  { %v76_v30 = vmul.f32 %v75_v27, %v70_v28 }
  0x99   :  { %v77_v32 = vadd.f32 %v76_v30, %v73_v29 }
  0x9b   :  { %v80_v33 = vadd.f32 %v79_v31, %v77_v32 }
  0x9d   :  { %82 = vst.msk [vmem:[%s144_s2] sm:$0x3] %vm81_vm0, %v80_v33 }
  0x9e   :  { %87 = vsyncpa [#allocation3], 1 }

</bundles_post_ra>
